<compile_context>
chip_gen: v5e
topology: v5e:2x2
jax: 0.10.0
libtpu: 0.0.40
codegen_flags: <defaults>
</compile_context>

<pallas_src>
import functools

import jax
import jax.numpy as jnp
from jax.experimental import pallas as pl
from jax.experimental.pallas import tpu as pltpu


def _round_up(a: int, b: int) -> int:
    return (a + b - 1) // b * b


def _linear_lora_kernel(x_ref, h_ref, wacat_ref, wc_ref, wlin_ref, b_ref,
                        wb_ref, y_ref, hn_ref, lora_sc, *, rank, r_p):
    x = x_ref[...].astype(jnp.bfloat16)              # (TN, Din_p)

    @pl.when(pl.program_id(1) == 0)
    def _():
        # Fused x-side LoRA dot: x @ [W_a | W_a@W_d] -> (TN, 2*r_p). One MXU
        # weight push instead of two half-width (r_p) pushes.
        t = jnp.dot(x, wacat_ref[...], preferred_element_type=jnp.float32)
        new_x = t[:, :r_p]                            # x @ W_a
        x_ad = t[:, r_p:]                             # x @ (W_a @ W_d)

        # SSM state update: h_t @ (W_c + I) + x @ (W_a @ W_d); residual folded
        # into the weight, bf16 MXU inputs, f32 accumulation / state math.
        h_t = h_ref[...]                              # (TN, r_p) f32
        h_t1 = jnp.dot(h_t.astype(jnp.bfloat16), wc_ref[...],
                       preferred_element_type=jnp.float32) + x_ad

        # Per-token min/max over the REAL rank lanes only (lane dim is padded
        # to 128 for lane-dense stores; padded lanes must not contribute).
        lane = jax.lax.broadcasted_iota(jnp.int32, h_t1.shape, 1)
        valid = lane < rank
        min_val = jnp.min(jnp.where(valid, h_t1, jnp.inf), axis=-1, keepdims=True)
        max_val = jnp.max(jnp.where(valid, h_t1, -jnp.inf), axis=-1, keepdims=True)
        inv = pl.reciprocal(max_val - min_val + 1e-8, approx=True)
        h_norm = jnp.where(valid, (h_t1 - min_val) * inv, 0.0)
        hn_ref[...] = h_norm

        # leaky_relu (PyTorch default slope 0.01); dropout(0.1) is eval identity.
        act = jnp.where(h_norm >= 0, h_norm, 0.01 * h_norm)
        # alpha is pre-folded into W_b; cache the LoRA-side LHS in bf16 so the
        # Dout tiles (j > 0) reuse it without recomputing the SSM path.
        lora_sc[...] = (new_x + act).astype(lora_sc.dtype)

    # Per Dout tile: base linear + LoRA projection, f32 accumulate, one store.
    y = jnp.dot(x, wlin_ref[...], preferred_element_type=jnp.float32)
    y = y + b_ref[...]
    y = y + jnp.dot(lora_sc[...], wb_ref[...], preferred_element_type=jnp.float32)
    y_ref[...] = y.astype(y_ref.dtype)


def prepare_params(W_lin, b_lin, W_a, W_b, W_c, W_d, alpha):
    """One-time weight prep: transpose, fuse, fold alpha / residual, cast, pad."""
    Dout, Din = W_lin.shape
    rank = W_a.shape[1]
    din_p = _round_up(Din, 128)
    dout_p = _round_up(Dout, 128)
    r_p = _round_up(rank, 128)

    def pad2(a, rows, cols, dtype):
        a = jnp.asarray(a, dtype)
        return jnp.pad(a, ((0, rows - a.shape[0]), (0, cols - a.shape[1])))

    # Fused x-side LoRA weight: [W_a | W_a @ W_d], one wide bf16 matmul.
    wa_p = pad2(W_a, din_p, r_p, jnp.bfloat16)
    wad_p = pad2(W_a @ W_d, din_p, r_p, jnp.bfloat16)
    wacat = jnp.concatenate([wa_p, wad_p], axis=1)              # (Din_p, 2*r_p)

    params = dict(
        wacat=wacat,
        wc=pad2(W_c + jnp.eye(rank, dtype=W_c.dtype), r_p, r_p, jnp.bfloat16),
        wlin_t=pad2(W_lin.T, din_p, dout_p, jnp.bfloat16),       # (Din, Dout)
        bias=pad2(b_lin.reshape(1, Dout), 1, dout_p, jnp.float32),
        wb=pad2(alpha * W_b, r_p, dout_p, jnp.bfloat16),          # alpha folded
    )
    dims = dict(din=Din, dout=Dout, rank=rank,
                din_p=din_p, dout_p=dout_p, r_p=r_p)
    return params, dims


def linear_with_lora(x, h_t, params, dims, *, tile_n=512, tile_dout=None,
                     out_dtype=jnp.bfloat16):
    """x: (B, S, Din), h_t: (B, S, rank) -> (y (B,S,Dout), h_norm (B,S,rank))."""
    B, S, Din = x.shape
    rank, Dout = dims["rank"], dims["dout"]
    din_p, dout_p, r_p = dims["din_p"], dims["dout_p"], dims["r_p"]
    N = B * S

    tn = min(tile_n, _round_up(N, 16))          # multiple of 16 (bf16 sublanes)
    n_p = _round_up(N, tn)

    # Dout tile: whole Dout when small, else 128-aligned divisor of dout_p.
    if tile_dout is None:
        tile_dout = dout_p if dout_p <= 2048 else 1024
    td = max(128, min(tile_dout, dout_p) // 128 * 128)
    while dout_p % td != 0:
        td -= 128
    d_tiles = dout_p // td
    dout_resident = d_tiles == 1

    # Activations: pad only when shapes require it (no separate cast pass; the
    # kernel casts x / h to bf16 for the MXU internally).
    x2 = x.reshape(N, Din)
    if (n_p, din_p) != (N, Din):
        x2 = jnp.pad(x2, ((0, n_p - N), (0, din_p - Din)))
    h2 = h_t.reshape(N, rank).astype(jnp.float32)
    if (n_p, r_p) != (N, rank):
        h2 = jnp.pad(h2, ((0, n_p - N), (0, r_p - rank)))

    grid = (n_p // tn, d_tiles)

    def resident_spec(shape):
        # Constant index_map -> single buffer (no double-buffering of weights).
        return pl.BlockSpec(shape, lambda i, j: (0, 0),
                            pipeline_mode=pl.Buffered(1))

    def dout_spec(shape):
        if dout_resident:
            return pl.BlockSpec(shape, lambda i, j: (0, 0),
                                pipeline_mode=pl.Buffered(1))
        return pl.BlockSpec(shape, lambda i, j: (0, j))

    in_specs = [
        pl.BlockSpec((tn, din_p), lambda i, j: (i, 0)),   # x tile (re-used over j)
        pl.BlockSpec((tn, r_p), lambda i, j: (i, 0)),     # h_t tile
        resident_spec((din_p, 2 * r_p)),                  # [W_a | W_a@W_d]
        resident_spec((r_p, r_p)),                        # W_c + I
        dout_spec((din_p, td)),                           # W_lin^T tile
        dout_spec((1, td)),                               # bias tile
        dout_spec((r_p, td)),                             # alpha * W_b tile
    ]
    out_specs = [
        pl.BlockSpec((tn, td), lambda i, j: (i, j)),      # y
        pl.BlockSpec((tn, r_p), lambda i, j: (i, 0)),     # h_norm
    ]

    # VMEM budget: single-buffered resident weights + (double-)buffered tiles.
    x_bytes = jnp.dtype(x2.dtype).itemsize
    y_bytes = jnp.dtype(out_dtype).itemsize
    resident_bytes = params["wacat"].size * 2 + params["wc"].size * 2
    dout_w_bytes = (1 if dout_resident else 2) * (din_p * td * 2 + td * 4
                                                  + r_p * td * 2)
    act_bytes = (2 * tn * (din_p * x_bytes + r_p * 4 + td * y_bytes + r_p * 4)
                 + tn * r_p * 2)
    need = resident_bytes + dout_w_bytes + act_bytes
    try:
        cap = int(pltpu.get_tpu_info().vmem_capacity_bytes) * 3 // 4
    except Exception:  # interpret mode / unknown chip
        cap = 96 * 2**20
    vmem_limit = int(min(cap, max(32 * 2**20, int(1.5 * need))))

    weight_hbm = sum(int(p.size * p.dtype.itemsize) for p in params.values())
    cost = pl.CostEstimate(
        flops=2 * N * (Din * Dout + 2 * Din * rank + rank * rank + rank * Dout),
        transcendentals=0,
        bytes_accessed=int(x2.size * x_bytes + h2.size * 4 + weight_hbm
                           + n_p * dout_p * y_bytes + n_p * r_p * 4),
    )

    kernel = functools.partial(_linear_lora_kernel, rank=rank, r_p=r_p)
    y2, hn2 = pl.pallas_call(
        kernel,
        grid=grid,
        in_specs=in_specs,
        out_specs=out_specs,
        out_shape=(
            jax.ShapeDtypeStruct((n_p, dout_p), out_dtype),
            jax.ShapeDtypeStruct((n_p, r_p), jnp.float32),
        ),
        scratch_shapes=[pltpu.VMEM((tn, r_p), jnp.bfloat16)],   # cached LoRA LHS
        compiler_params=pltpu.CompilerParams(
            dimension_semantics=("parallel", "arbitrary"),
            vmem_limit_bytes=vmem_limit,
        ),
        cost_estimate=cost,
    )(x2, h2, params["wacat"], params["wc"], params["wlin_t"], params["bias"],
      params["wb"])

    y = y2 if (n_p == N and dout_p == Dout) else y2[:N, :Dout]
    hn = hn2 if (n_p == N and r_p == rank) else hn2[:N, :rank]
    return y.reshape(B, S, Dout), hn.reshape(B, S, rank)


def _reference(x, h_t, W_lin, b_lin, W_a, W_b, W_c, W_d, alpha):
    base = jnp.einsum("bsd,od->bso", x, W_lin) + b_lin
    new_x = x @ W_a
    h_t1 = h_t @ W_c + new_x @ W_d + h_t
    mn = jnp.min(h_t1, axis=-1, keepdims=True)
    mx = jnp.max(h_t1, axis=-1, keepdims=True)
    hn = (h_t1 - mn) / (mx - mn + 1e-8)
    act = jnp.where(hn >= 0, hn, 0.01 * hn)
    y = base + alpha * ((new_x + act) @ W_b)
    return y, hn


if __name__ == "__main__":
    # Small shapes consistent with the module's forward (3-D token input).
    B, S, Din, Dout, rank = 2, 8, 32, 16, 8
    alpha = 16.0

    key = jax.random.PRNGKey(0)
    k_x, k_h, k_wl, k_bl, k_wa, k_wb, k_wc, k_wd = jax.random.split(key, 8)

    x = jax.random.normal(k_x, (B, S, Din), dtype=jnp.float32)
    # TODO(synk): deterministic stand-in for time_axis.get_current_time(...);
    # already shaped (B, S, rank) so the randperm / padding branches are no-ops.
    h_t = jax.random.uniform(k_h, (B, S, rank), dtype=jnp.float32)

    W_lin = jax.random.normal(k_wl, (Dout, Din), dtype=jnp.float32) * 0.05
    b_lin = jax.random.normal(k_bl, (Dout,), dtype=jnp.float32) * 0.01
    W_a = jax.random.normal(k_wa, (Din, rank), dtype=jnp.float32) / jnp.sqrt(rank)

    def run_case(W_b, W_c, W_d, rel):
        params, dims = prepare_params(W_lin, b_lin, W_a, W_b, W_c, W_d, alpha)
        y, hn = jax.block_until_ready(linear_with_lora(x, h_t, params, dims))
        y_ref, hn_ref = _reference(x, h_t, W_lin, b_lin, W_a, W_b, W_c, W_d, alpha)
        for name, got, want in (("y", y, y_ref), ("h_norm", hn, hn_ref)):
            scale = float(jnp.max(jnp.abs(want))) + 1e-6
            err = float(jnp.max(jnp.abs(got.astype(jnp.float32) - want)))
            assert err <= rel * scale, (
                f"{name}: max abs err {err:.3e} vs scale {scale:.3e}")

    # Case 1: module __init__ values (W_b = W_c = W_d = 0  =>  y == linear(x)).
    zeros_rr = jnp.zeros((rank, rank), jnp.float32)
    run_case(jnp.zeros((rank, Dout), jnp.float32), zeros_rr, zeros_rr, rel=2e-2)

    # Case 2: non-zero LoRA/SSM weights to exercise the full path
    # (bf16 MXU inputs / bf16 y output => tolerance relative to output scale).
    W_b = jax.random.normal(k_wb, (rank, Dout), jnp.float32) * 0.1
    W_c = jax.random.normal(k_wc, (rank, rank), jnp.float32) * 0.1
    W_d = jax.random.normal(k_wd, (rank, rank), jnp.float32) * 0.1
    run_case(W_b, W_c, W_d, rel=2e-2)

    print("KERNEL_OK")
</pallas_src>

<mosaic_0001>
module attributes {stable_mosaic.version = 11 : i64} {
  func.func @_linear_lora_kernel(%arg0: i32, %arg1: i32, %arg2: memref<16x128xf32, #tpu.memory_space<vmem>>, %arg3: memref<16x128xf32, #tpu.memory_space<vmem>>, %arg4: memref<128x256xbf16, #tpu.memory_space<vmem>>, %arg5: memref<128x128xbf16, #tpu.memory_space<vmem>>, %arg6: memref<128x128xbf16, #tpu.memory_space<vmem>>, %arg7: memref<1x128xf32, #tpu.memory_space<vmem>>, %arg8: memref<128x128xbf16, #tpu.memory_space<vmem>>, %arg9: memref<16x128xbf16, #tpu.memory_space<vmem>>, %arg10: memref<16x128xf32, #tpu.memory_space<vmem>>, %arg11: memref<16x128xbf16, #tpu.memory_space<vmem>>) attributes {dimension_semantics = [#tpu.dimension_semantics<parallel>, #tpu.dimension_semantics<arbitrary>], iteration_bounds = array<i64: 1, 1>, scalar_prefetch = 0 : i64, scratch_operands = 1 : i64, tpu.core_type = #tpu.core_type<tc>, window_params = [{transform_indices = @transform_0, window_bounds = array<i64: 16, 128>}, {transform_indices = @transform_1, window_bounds = array<i64: 16, 128>}, {pipeline_mode = #tpu.pipeline_mode<synchronous>, transform_indices = @transform_2, window_bounds = array<i64: 128, 256>}, {pipeline_mode = #tpu.pipeline_mode<synchronous>, transform_indices = @transform_3, window_bounds = array<i64: 128, 128>}, {pipeline_mode = #tpu.pipeline_mode<synchronous>, transform_indices = @transform_4, window_bounds = array<i64: 128, 128>}, {pipeline_mode = #tpu.pipeline_mode<synchronous>, transform_indices = @transform_5, window_bounds = array<i64: 1, 128>}, {pipeline_mode = #tpu.pipeline_mode<synchronous>, transform_indices = @transform_6, window_bounds = array<i64: 128, 128>}, {transform_indices = @transform_7, window_bounds = array<i64: 16, 128>}, {transform_indices = @transform_8, window_bounds = array<i64: 16, 128>}]} {
    %c0 = arith.constant 0 : index
    %c0_0 = arith.constant 0 : index
    %0 = vector.load %arg2[%c0, %c0_0] : memref<16x128xf32, #tpu.memory_space<vmem>>, vector<16x128xf32>
    %1 = arith.truncf %0 : vector<16x128xf32> to vector<16x128xbf16>
    %c0_i32 = arith.constant 0 : i32
    %2 = arith.cmpi eq, %arg1, %c0_i32 : i32
    %3 = arith.extui %2 : i1 to i32
    %c0_i32_1 = arith.constant 0 : i32
    %4 = arith.cmpi ne, %3, %c0_i32_1 : i32
    scf.if %4 {
      %c0_13 = arith.constant 0 : index
      %c0_14 = arith.constant 0 : index
      %16 = vector.load %arg4[%c0_13, %c0_14] : memref<128x256xbf16, #tpu.memory_space<vmem>>, vector<128x256xbf16>
      %cst_15 = arith.constant dense<0.000000e+00> : vector<16x256xf32>
      %17 = tpu.matmul %1, %16, %cst_15 {dimension_numbers = #tpu.dot_dimension_numbers<[1], [0], [0], [1], [0, 0, 1, 1], [], []>} : vector<16x128xbf16>, vector<128x256xbf16>, vector<16x256xf32> -> vector<16x256xf32>
      %18 = vector.extract_strided_slice %17 {offsets = [0, 0], sizes = [16, 128], strides = [1, 1]} : vector<16x256xf32> to vector<16x128xf32>
      %19 = vector.extract_strided_slice %17 {offsets = [0, 128], sizes = [16, 128], strides = [1, 1]} : vector<16x256xf32> to vector<16x128xf32>
      %c0_16 = arith.constant 0 : index
      %c0_17 = arith.constant 0 : index
      %20 = vector.load %arg3[%c0_16, %c0_17] : memref<16x128xf32, #tpu.memory_space<vmem>>, vector<16x128xf32>
      %21 = arith.truncf %20 : vector<16x128xf32> to vector<16x128xbf16>
      %c0_18 = arith.constant 0 : index
      %c0_19 = arith.constant 0 : index
      %22 = vector.load %arg5[%c0_18, %c0_19] : memref<128x128xbf16, #tpu.memory_space<vmem>>, vector<128x128xbf16>
      %cst_20 = arith.constant dense<0.000000e+00> : vector<16x128xf32>
      %23 = tpu.matmul %21, %22, %cst_20 {dimension_numbers = #tpu.dot_dimension_numbers<[1], [0], [0], [1], [0, 0, 1, 1], [], []>} : vector<16x128xbf16>, vector<128x128xbf16>, vector<16x128xf32> -> vector<16x128xf32>
      %24 = arith.addf %23, %19 : vector<16x128xf32>
      %25 = tpu.iota {dimensions = array<i32: 1>} : vector<16x128xi32>
      %c8_i32 = arith.constant 8 : i32
      %26 = vector.broadcast %c8_i32 : i32 to vector<16x128xi32>
      %27 = arith.cmpi slt, %25, %26 : vector<16x128xi32>
      %cst_21 = arith.constant 0x7F800000 : f32
      %28 = vector.broadcast %cst_21 : f32 to vector<16x128xf32>
      %29 = arith.select %27, %24, %28 : vector<16x128xi1>, vector<16x128xf32>
      %cst_22 = arith.constant dense<0x7F800000> : vector<16xf32>
      %30 = vector.multi_reduction <minimumf>, %29, %cst_22 [1] : vector<16x128xf32> to vector<16xf32>
      %31 = vector.shape_cast %30 : vector<16xf32> to vector<16x1xf32>
      %cst_23 = arith.constant 0xFF800000 : f32
      %32 = vector.broadcast %cst_23 : f32 to vector<16x128xf32>
      %33 = arith.select %27, %24, %32 : vector<16x128xi1>, vector<16x128xf32>
      %cst_24 = arith.constant dense<0xFF800000> : vector<16xf32>
      %34 = vector.multi_reduction <maximumf>, %33, %cst_24 [1] : vector<16x128xf32> to vector<16xf32>
      %35 = vector.shape_cast %34 : vector<16xf32> to vector<16x1xf32>
      %36 = arith.subf %35, %31 : vector<16x1xf32>
      %cst_25 = arith.constant 9.99999993E-9 : f32
      %37 = vector.broadcast %cst_25 : f32 to vector<16x1xf32>
      %38 = arith.addf %36, %37 : vector<16x1xf32>
      %39 = tpu.reciprocal %38 {approx = true} : vector<16x1xf32> -> vector<16x1xf32>
      %40 = vector.broadcast %31 : vector<16x1xf32> to vector<16x128xf32>
      %41 = arith.subf %24, %40 : vector<16x128xf32>
      %42 = vector.broadcast %39 : vector<16x1xf32> to vector<16x128xf32>
      %43 = arith.mulf %41, %42 : vector<16x128xf32>
      %cst_26 = arith.constant 0.000000e+00 : f32
      %44 = vector.broadcast %cst_26 : f32 to vector<16x128xf32>
      %45 = arith.select %27, %43, %44 : vector<16x128xi1>, vector<16x128xf32>
      %c0_27 = arith.constant 0 : index
      %c0_28 = arith.constant 0 : index
      %46 = vector.load %arg10[%c0_27, %c0_28] : memref<16x128xf32, #tpu.memory_space<vmem>>, vector<16x128xf32>
      tpu.vector_store %arg10[%c0_27, %c0_28], %45 {strides = array<i32>} : memref<16x128xf32, #tpu.memory_space<vmem>>, vector<16x128xf32>,
      %cst_29 = arith.constant 0.000000e+00 : f32
      %47 = vector.broadcast %cst_29 : f32 to vector<16x128xf32>
      %48 = arith.cmpf oge, %45, %47 : vector<16x128xf32>
      %cst_30 = arith.constant 0.00999999977 : f32
      %49 = vector.broadcast %cst_30 : f32 to vector<16x128xf32>
      %50 = arith.mulf %49, %45 : vector<16x128xf32>
      %51 = arith.select %48, %45, %50 : vector<16x128xi1>, vector<16x128xf32>
      %52 = arith.addf %18, %51 : vector<16x128xf32>
      %53 = arith.truncf %52 : vector<16x128xf32> to vector<16x128xbf16>
      %c0_31 = arith.constant 0 : index
      %c0_32 = arith.constant 0 : index
      %54 = vector.load %arg11[%c0_31, %c0_32] : memref<16x128xbf16, #tpu.memory_space<vmem>>, vector<16x128xbf16>
      tpu.vector_store %arg11[%c0_31, %c0_32], %53 {strides = array<i32>} : memref<16x128xbf16, #tpu.memory_space<vmem>>, vector<16x128xbf16>,
    } else {
    }
    %c0_2 = arith.constant 0 : index
    %c0_3 = arith.constant 0 : index
    %5 = vector.load %arg6[%c0_2, %c0_3] : memref<128x128xbf16, #tpu.memory_space<vmem>>, vector<128x128xbf16>
    %cst = arith.constant dense<0.000000e+00> : vector<16x128xf32>
    %6 = tpu.matmul %1, %5, %cst {dimension_numbers = #tpu.dot_dimension_numbers<[1], [0], [0], [1], [0, 0, 1, 1], [], []>} : vector<16x128xbf16>, vector<128x128xbf16>, vector<16x128xf32> -> vector<16x128xf32>
    %c0_4 = arith.constant 0 : index
    %c0_5 = arith.constant 0 : index
    %7 = vector.load %arg7[%c0_4, %c0_5] : memref<1x128xf32, #tpu.memory_space<vmem>>, vector<1x128xf32>
    %8 = vector.broadcast %7 : vector<1x128xf32> to vector<16x128xf32>
    %9 = arith.addf %6, %8 : vector<16x128xf32>
    %c0_6 = arith.constant 0 : index
    %c0_7 = arith.constant 0 : index
    %10 = vector.load %arg11[%c0_6, %c0_7] : memref<16x128xbf16, #tpu.memory_space<vmem>>, vector<16x128xbf16>
    %c0_8 = arith.constant 0 : index
    %c0_9 = arith.constant 0 : index
    %11 = vector.load %arg8[%c0_8, %c0_9] : memref<128x128xbf16, #tpu.memory_space<vmem>>, vector<128x128xbf16>
    %cst_10 = arith.constant dense<0.000000e+00> : vector<16x128xf32>
    %12 = tpu.matmul %10, %11, %cst_10 {dimension_numbers = #tpu.dot_dimension_numbers<[1], [0], [0], [1], [0, 0, 1, 1], [], []>} : vector<16x128xbf16>, vector<128x128xbf16>, vector<16x128xf32> -> vector<16x128xf32>
    %13 = arith.addf %9, %12 : vector<16x128xf32>
    %14 = arith.truncf %13 : vector<16x128xf32> to vector<16x128xbf16>
    %c0_11 = arith.constant 0 : index
    %c0_12 = arith.constant 0 : index
    %15 = vector.load %arg9[%c0_11, %c0_12] : memref<16x128xbf16, #tpu.memory_space<vmem>>, vector<16x128xbf16>
    tpu.vector_store %arg9[%c0_11, %c0_12], %14 {strides = array<i32>} : memref<16x128xbf16, #tpu.memory_space<vmem>>, vector<16x128xbf16>,
    return
  }
  func.func @transform_0(%arg0: i32, %arg1: i32) -> (i32, i32) {
    %c0_i32 = arith.constant 0 : i32
    %c0_i32_0 = arith.constant 0 : i32
    return %arg0, %c0_i32 : i32, i32
  }
  func.func @transform_1(%arg0: i32, %arg1: i32) -> (i32, i32) {
    %c0_i32 = arith.constant 0 : i32
    %c0_i32_0 = arith.constant 0 : i32
    return %arg0, %c0_i32 : i32, i32
  }
  func.func @transform_2(%arg0: i32, %arg1: i32) -> (i32, i32) {
    %c0_i32 = arith.constant 0 : i32
    %c0_i32_0 = arith.constant 0 : i32
    %c0_i32_1 = arith.constant 0 : i32
    return %c0_i32, %c0_i32_0 : i32, i32
  }
  func.func @transform_3(%arg0: i32, %arg1: i32) -> (i32, i32) {
    %c0_i32 = arith.constant 0 : i32
    %c0_i32_0 = arith.constant 0 : i32
    %c0_i32_1 = arith.constant 0 : i32
    return %c0_i32, %c0_i32_0 : i32, i32
  }
  func.func @transform_4(%arg0: i32, %arg1: i32) -> (i32, i32) {
    %c0_i32 = arith.constant 0 : i32
    %c0_i32_0 = arith.constant 0 : i32
    %c0_i32_1 = arith.constant 0 : i32
    return %c0_i32, %c0_i32_0 : i32, i32
  }
  func.func @transform_5(%arg0: i32, %arg1: i32) -> (i32, i32) {
    %c0_i32 = arith.constant 0 : i32
    %c0_i32_0 = arith.constant 0 : i32
    %c0_i32_1 = arith.constant 0 : i32
    return %c0_i32, %c0_i32_0 : i32, i32
  }
  func.func @transform_6(%arg0: i32, %arg1: i32) -> (i32, i32) {
    %c0_i32 = arith.constant 0 : i32
    %c0_i32_0 = arith.constant 0 : i32
    %c0_i32_1 = arith.constant 0 : i32
    return %c0_i32, %c0_i32_0 : i32, i32
  }
  func.func @transform_7(%arg0: i32, %arg1: i32) -> (i32, i32) {
    %c0_i32 = arith.constant 0 : i32
    return %arg0, %arg1 : i32, i32
  }
  func.func @transform_8(%arg0: i32, %arg1: i32) -> (i32, i32) {
    %c0_i32 = arith.constant 0 : i32
    %c0_i32_0 = arith.constant 0 : i32
    return %arg0, %c0_i32 : i32, i32
  }
}

</mosaic_0001>

<bundles_post_ra>
// kernel: tpu_custom_call.1
= control target key start
LH: loop header
LB: loop body
LE: loop exit
PB: predicated region body
PF: predicated region fallthrough
CT: control target
= control target key end

     0   :  { %14 = vsyncpa [#allocation4], 0  ;;  %s1150_s0 = inlined_call_operand.hbm [shape: f32[16,128], index: 0, kind: input, shape index: {}]   ;;  %s1151_s1 = inlined_call_operand.hbm [shape: f32[16,128], index: 1, kind: input, shape index: {}]   ;;  %s1152_s2 = inlined_call_operand.hbm [shape: bf16[128,256], index: 2, kind: input, shape index: {}]   ;;  %s1153_s3 = inlined_call_operand.hbm [shape: bf16[128,128], index: 3, kind: input, shape index: {}]   ;;  %s1154_s4 = inlined_call_operand.hbm [shape: bf16[128,128], index: 4, kind: input, shape index: {}]   ;;  %s1155_s5 = inlined_call_operand.vmem [shape: f32[1,128], index: 5, kind: input, shape index: {}]   ;;  %s1156_s6 = inlined_call_operand.hbm [shape: bf16[128,128], index: 6, kind: input, shape index: {}]   ;;  %s1157_s7 = inlined_call_operand.hbm [shape: bf16[16,128], index: 7, kind: output, shape index: {0}]   ;;  %s1158_s8 = inlined_call_operand.hbm [shape: f32[16,128], index: 8, kind: output, shape index: {1}]  }
   0x1   :  { %15 = vsyncpa [#allocation7], 0 }
   0x2   :  { %16 = vsyncpa [#allocation10], 0 }
   0x3   :  { %17 = vsyncpa [#allocation13], 0 }
   0x4   :  { %18 = vsyncpa [#allocation5], 0 }
   0x5   :  { %19 = vsyncpa [#allocation16], 0  ;;  %s37_s29 = sshll.u32 %s1151_s1, 4  ;;  %s1027_s30 = smov [#allocation6]   ;;  %s38_s29 = int_to_ptr.hbm [resolvable:$true] %s37_s29 }
   0x6   :  { %s39_s9 = sshll.u32 %s1027_s30, 4  ;;  %s63_s12 = sshll.u32 %s1153_s3, 4  ;;  %s40_s9 = int_to_ptr.vmem [resolvable:$true] %s39_s9  ;;  %s64_s12 = int_to_ptr.hbm [resolvable:$true] %s63_s12 }
   0x7   :  { %s1028_s13 = smov 128   ;;  %s1029_s14 = smov 8  }
   0x8   :  { %45 = dma.hbm_to_vmem [thread:$0]  %s38_s29, 256, %s40_s9, [#allocation7], %s1028_s13, %s1028_s13, %s1029_s14  }
   0x9   :  { %s1030_s15 = smov [#allocation9]   ;;  %s1031_s17 = smov 64  }
   0xa   :  { %s65_s16 = sshll.u32 %s1030_s15, 4  ;;  %s1032_s1 = smov 4   ;;  %s66_s16 = int_to_ptr.vmem [resolvable:$true] %s65_s16 }
   0xb   :  { %71 = dma.hbm_to_vmem [thread:$0]  %s64_s12, 1024, %s66_s16, [#allocation10], %s1031_s17, %s1031_s17, %s1032_s1  }
   0xc   :  { %s24_s3 = sshll.u32 %s1150_s0, 4  ;;  %s1033_s20 = smov [#allocation3]   ;;  %s25_s3 = int_to_ptr.hbm [resolvable:$true] %s24_s3 }
   0xd   :  { %s26_s21 = sshll.u32 %s1033_s20, 4  ;;  %s50_s24 = sshll.u32 %s1152_s2, 4  ;;  %s27_s21 = int_to_ptr.vmem [resolvable:$true] %s26_s21  ;;  %s51_s24 = int_to_ptr.hbm [resolvable:$true] %s50_s24 }
   0xe   :  { %32 = dma.hbm_to_vmem [thread:$0]  %s25_s3, 256, %s27_s21, [#allocation4], %s1028_s13, %s1028_s13, %s1029_s14  }
   0xf   :  { %s1034_s25 = smov [#allocation8]   ;;  %s76_s29 = sshll.u32 %s1154_s4, 4  ;;  %s77_s29 = int_to_ptr.hbm [resolvable:$true] %s76_s29 }
  0x10   :  { %s52_s26 = sshll.u32 %s1034_s25, 4  ;;  %s91_s2 = sshll.u32 %s1156_s6, 4  ;;  %s53_s26 = int_to_ptr.vmem [resolvable:$true] %s52_s26  ;;  %s92_s2 = int_to_ptr.hbm [resolvable:$true] %s91_s2 }
  0x11   :  { %58 = dma.hbm_to_vmem [thread:$0]  %s51_s24, 2048, %s53_s26, [#allocation7], %s1028_s13, %s1028_s13, %s1029_s14  }
  0x12   :  { %s1035_s9 = smov [#allocation11]   ;;  %s1036_s11 = smov [#allocation12]  }
  0x13   :  { %s78_s10 = sshll.u32 %s1035_s9, 4  ;;  %s93_s4 = sshll.u32 %s1036_s11, 4  ;;  %s79_s10 = int_to_ptr.vmem [resolvable:$true] %s78_s10  ;;  %s94_s4 = int_to_ptr.vmem [resolvable:$true] %s93_s4 }
  0x14   :  { %84 = dma.hbm_to_vmem [thread:$0]  %s77_s29, 1024, %s79_s10, [#allocation10], %s1031_s17, %s1031_s17, %s1032_s1  }
  0x15   :  { %99 = dma.hbm_to_vmem [thread:$0]  %s92_s2, 1024, %s94_s4, [#allocation13], %s1031_s17, %s1031_s17, %s1032_s1  }
  0x16   :  { %1015 = dma.done.wait [#allocation4], 256  }
  0x17   :  { %1016 = vsyncadd [#allocation4], 4294967040 }
  0x18   :  { %1017 = dma.done.wait [#allocation7], 2304  }
  0x19   :  { %1018 = vsyncadd [#allocation7], 4294964992 }
  0x1a   :  { %1019 = dma.done.wait [#allocation10], 2048  }
  0x1b   :  { %1020 = vsyncadd [#allocation10], 4294965248 }
  0x1c   :  { %1021 = dma.done.wait [#allocation13], 1024  }
  0x1d   :  { %1022 = vsyncadd [#allocation13], 4294966272  ;;  %v769_v0 = vld [vmem:[#allocation8 + $0x74] sm:$0xf]  ;;  %v651_v1 = vld [vmem:[#allocation8 + $0x78] sm:$0xf0] }
  0x1e   :  { %v778_v2 = vld [vmem:[#allocation9 + $0x38] sm:$0xff]  ;;  %v654_v3 = vor.u32 %v769_v0, %v651_v1  ;;  %v767_v4 = vld [vmem:[#allocation8 + $0x64] sm:$0xf]  ;;  %v643_v5 = vld [vmem:[#allocation8 + $0x68] sm:$0xf0]  ;;  %v336_v0 = vlaneseq  ;;  %s1037_s6 = smov [#allocation15]  }
  0x1f   :  { %322 = vmatpush.bf16.msra.mxu2 %v778_v2  ;;  %v777_v6 = vld [vmem:[#allocation9 + $0x30] sm:$0xff]  ;;  %v646_v7 = vor.u32 %v767_v4, %v643_v5  ;;  %v635_v9 = vld [vmem:[#allocation8 + $0x58] sm:$0xf0]  ;;  %v776_v10 = vld [vmem:[#allocation9 + $0x28] sm:$0xff]  ;;  %s568_s12 = sshll.u32 %s1037_s6, 4  ;;  %s570_s18 = sshll.u32 %s1158_s8, 4  ;;  %s569_s12 = int_to_ptr.vmem [resolvable:$true] %s568_s12  ;;  %s571_s18 = int_to_ptr.hbm [resolvable:$true] %s570_s18 }
  0x20   :  { %241 = vmatpush.bf16.msra.mxu1 %v654_v3  ;;  %v765_v8 = vld [vmem:[#allocation8 + $0x54] sm:$0xf]  ;;  %v763_v12 = vld [vmem:[#allocation8 + $0x44] sm:$0xf]  ;;  %v627_v13 = vld [vmem:[#allocation8 + $0x48] sm:$0xf0] }
  0x21   :  { %v638_v11 = vor.u32 %v765_v8, %v635_v9  ;;  %v649_v14 = vld [vmem:[#allocation8 + $0x70] sm:$0xf]  ;;  %v770_v15 = vld [vmem:[#allocation8 + $0x74] sm:$0xf0]  ;;  %v775_v16 = vld [vmem:[#allocation9 + $0x20] sm:$0xff]  ;;  %v630_v20 = vor.u32 %v763_v12, %v627_v13  ;;  %v1120_v1 = vand.u32 127, %v336_v0 }
  0x22   :  { %v650_v17 = vor.u32 %v770_v15, %v649_v14  ;;  %v641_v18 = vld [vmem:[#allocation8 + $0x60] sm:$0xf]  ;;  %v768_v19 = vld [vmem:[#allocation8 + $0x64] sm:$0xf0]  ;;  %v761_v21 = vld [vmem:[#allocation8 + $0x34] sm:$0xf] }
  0x23   :  { %323 = vmatpush.bf16.msra.mxu2 %v777_v6  ;;  %v619_v22 = vld [vmem:[#allocation8 + $0x38] sm:$0xf0]  ;;  %v642_v23 = vor.u32 %v768_v19, %v641_v18  ;;  %v633_v24 = vld [vmem:[#allocation8 + $0x50] sm:$0xf]  ;;  %v766_v25 = vld [vmem:[#allocation8 + $0x54] sm:$0xf0] }
  0x24   :  { %242 = vmatpush.bf16.msra.mxu1 %v646_v7  ;;  %227 = vmatpush.bf16.msra.mxu0 %v650_v17  ;;  %v774_v26 = vld [vmem:[#allocation9 + $0x18] sm:$0xff]  ;;  %v622_v27 = vor.u32 %v761_v21, %v619_v22  ;;  %v759_v28 = vld [vmem:[#allocation8 + $0x24] sm:$0xf]  ;;  %v611_v29 = vld [vmem:[#allocation8 + $0x28] sm:$0xf0]  ;;  %v634_v30 = vor.u32 %v766_v25, %v633_v24  ;;  %vm338_vm0 = vcmp.lt.s32.totalorder %v1120_v1, 8 }
  0x25   :  { %v625_v31 = vld [vmem:[#allocation8 + $0x40] sm:$0xf]  ;;  %v764_v32 = vld [vmem:[#allocation8 + $0x44] sm:$0xf0]  ;;  %v773_v33 = vld [vmem:[#allocation9 + $0x10] sm:$0xff]  ;;  %v614_v34 = vor.u32 %v759_v28, %v611_v29  ;;  %s1038_s20 = smov [#allocation14]  }
  0x26   :  { %v757_v35 = vld [vmem:[#allocation8 + $0x14] sm:$0xf]  ;;  %v603_v36 = vld [vmem:[#allocation8 + $0x18] sm:$0xf0]  ;;  %v626_v37 = vor.u32 %v764_v32, %v625_v31  ;;  %v617_v38 = vld [vmem:[#allocation8 + $0x30] sm:$0xf] }
  0x27   :  { %324 = vmatpush.bf16.msra.mxu2 %v776_v10  ;;  %v762_v39 = vld [vmem:[#allocation8 + $0x34] sm:$0xf0]  ;;  %v772_v40 = vld [vmem:[#allocation9 + $0x8] sm:$0xff]  ;;  %v606_v41 = vor.u32 %v757_v35, %v603_v36  ;;  %v755_v42 = vld [vmem:[#allocation8 + $0x4] sm:$0xf]  ;;  %s555_s21 = sshll.u32 %s1038_s20, 4  ;;  %s556_s21 = int_to_ptr.vmem [resolvable:$true] %s555_s21 }
  0x28   :  { %243 = vmatpush.bf16.msra.mxu1 %v638_v11  ;;  %228 = vmatpush.bf16.msra.mxu0 %v642_v23  ;;  %v595_v43 = vld [vmem:[#allocation8 + $0x8] sm:$0xf0]  ;;  %v618_v44 = vor.u32 %v762_v39, %v617_v38  ;;  %v609_v45 = vld [vmem:[#allocation8 + $0x20] sm:$0xf]  ;;  %v760_v46 = vld [vmem:[#allocation8 + $0x24] sm:$0xf0] }
  0x29   :  { %v771_v47 = vld [vmem:[#allocation9] sm:$0xff]  ;;  %v255_v48 = vld [vmem:[#allocation6] sm:$0xff]  ;;  %v256_v49 = vld [vmem:[#allocation6 + $0x8] sm:$0xff]  ;;  %v598_v50 = vor.u32 %v755_v42, %v595_v43  ;;  %v610_v53 = vor.u32 %v760_v46, %v609_v45  ;;  %s557_s23 = sshll.u32 %s1157_s7, 4  ;;  %s558_s23 = int_to_ptr.hbm [resolvable:$true] %s557_s23 }
  0x2a   :  { %v124_v51 = vld [vmem:[#allocation3] sm:$0xff]  ;;  %v125_v52 = vld [vmem:[#allocation3 + $0x8] sm:$0xff]  ;;  %v257_v54 = vpack.c.bf16 %v256_v49, %v255_v48  ;;  %v601_v56 = vld [vmem:[#allocation8 + $0x10] sm:$0xf] }
  0x2b   :  { %325 = vmatpush.bf16.msra.mxu2 %v775_v16  ;;  %v126_v55 = vpack.c.bf16 %v125_v52, %v124_v51  ;;  %v758_v57 = vld [vmem:[#allocation8 + $0x14] sm:$0xf0]  ;;  %v593_v59 = vld [vmem:[#allocation8] sm:$0xf]  ;;  %v756_v60 = vld [vmem:[#allocation8 + $0x4] sm:$0xf0] }
  0x2c   :  { %244 = vmatpush.bf16.msra.mxu1 %v630_v20  ;;  %229 = vmatpush.bf16.msra.mxu0 %v634_v30  ;;  %v602_v58 = vor.u32 %v758_v57, %v601_v56  ;;  %v594_v61 = vor.u32 %v756_v60, %v593_v59  ;;  %v786_v62 = vld [vmem:[#allocation11 + $0x38] sm:$0xff]  ;;  %v785_v63 = vld [vmem:[#allocation11 + $0x30] sm:$0xff]  ;;  %v784_v12 = vld [vmem:[#allocation11 + $0x28] sm:$0xff] }
  0x2d   :  { %445 = vmatpush.bf16.msra.mxu3 %v786_v62  ;;  %v783_v13 = vld [vmem:[#allocation11 + $0x20] sm:$0xff]  ;;  %v782_v14 = vld [vmem:[#allocation11 + $0x18] sm:$0xff]  ;;  %v781_v16 = vld [vmem:[#allocation11 + $0x10] sm:$0xff] }
  0x2e   :  { %v795_v15 = vld [vmem:[#allocation12 + $0x38] sm:$0xff]  ;;  %v794_v17 = vld [vmem:[#allocation12 + $0x30] sm:$0xff]  ;;  %v780_v18 = vld [vmem:[#allocation11 + $0x8] sm:$0xff] }
  0x2f   :  { %326 = vmatpush.bf16.msra.mxu2 %v774_v26  ;;  %v793_v19 = vld [vmem:[#allocation12 + $0x28] sm:$0xff]  ;;  %v779_v20 = vld [vmem:[#allocation11] sm:$0xff]  ;;  %v791_v22 = vld [vmem:[#allocation12 + $0x18] sm:$0xff] }
  0x30   :  { %245 = vmatpush.bf16.msra.mxu1 %v622_v27  ;;  %230 = vmatpush.bf16.msra.mxu0 %v626_v37  ;;  %v792_v21 = vld [vmem:[#allocation12 + $0x20] sm:$0xff]  ;;  %v790_v23 = vld [vmem:[#allocation12 + $0x10] sm:$0xff]  ;;  %v789_v24 = vld [vmem:[#allocation12 + $0x8] sm:$0xff] }
  0x31   :  { %446 = vmatpush.bf16.msra.mxu3 %v785_v63  ;;  %v788_v27 = vld [vmem:[#allocation12] sm:$0xff] }
  0x33   :  { %327 = vmatpush.bf16.msra.mxu2 %v773_v33 }
  0x34   :  { %246 = vmatpush.bf16.msra.mxu1 %v614_v34  ;;  %231 = vmatpush.bf16.msra.mxu0 %v618_v44 }
  0x35   :  { %447 = vmatpush.bf16.msra.mxu3 %v784_v12 }
  0x37   :  { %328 = vmatpush.bf16.msra.mxu2 %v772_v40 }
  0x38   :  { %247 = vmatpush.bf16.msra.mxu1 %v606_v41  ;;  %232 = vmatpush.bf16.msra.mxu0 %v610_v53 }
  0x39   :  { %448 = vmatpush.bf16.msra.mxu3 %v783_v13 }
  0x3b   :  { %329 = vmatpush.bf16.msra.mxu2 %v771_v47 }
  0x3c   :  { %248 = vmatpush.bf16.msra.mxu1 %v598_v50  ;;  %233 = vmatpush.bf16.msra.mxu0 %v602_v58 }
  0x3d   :  { %449 = vmatpush.bf16.msra.mxu3 %v782_v14 }
  0x3e   :  { %330 = vmatmul.bf16.vlgmr.msra.gmra.mxu2 %v257_v54  ;;  %v818_v54 = vld [vmem:[%s1155_s5] ss:$0 sm:$0xff] }
  0x3f   :  { %249 = vmatmul.bf16.vlgmr.msra.gmra.mxu1 %v126_v55 }
  0x40   :  { %234 = vmatpush.bf16.msra.mxu0 %v594_v61 }
  0x41   :  { %450 = vmatpush.bf16.msra.mxu3 %v781_v16 }
  0x43   :  { %235 = vmatmul.bf16.vlgmr.msra.gmra.mxu0 %v126_v55 }
  0x44   :  { %531 = vmatpush.bf16.msrb.mxu0 %v795_v15 }
  0x45   :  { %451 = vmatpush.bf16.msra.mxu3 %v780_v18 }
  0x48   :  { %532 = vmatpush.bf16.msrb.mxu0 %v794_v17 }
  0x49   :  { %452 = vmatpush.bf16.msra.mxu3 %v779_v20 }
  0x4c   :  { %533 = vmatpush.bf16.msrb.mxu0 %v793_v19  ;;  %453 = vmatmul.bf16.vlgmr.msra.gmra.mxu3 %v126_v55 }
  0x50   :  { %534 = vmatpush.bf16.msrb.mxu0 %v792_v21 }
  0x54   :  { %535 = vmatpush.bf16.msrb.mxu0 %v791_v22 }
  0x58   :  { %536 = vmatpush.bf16.msrb.mxu0 %v790_v23 }
  0x5c   :  { %537 = vmatpush.bf16.msrb.mxu0 %v789_v24 }
  0x60   :  { %538 = vmatpush.bf16.msrb.mxu0 %v788_v27 }
  0xbc   :  { %v250_v2 = vpop.f32.mrf.mxu1 }
  0xc0   :  { %v236_v38 = vpop.f32.mrf.mxu0 }
  0xc1   :  { %v331_v3 = vpop.f32.mrf.mxu2 }
  0xc2   :  { %v332_v4 = vadd.f32 %v331_v3, %v250_v2 }
  0xc4   :  { %v345_v5 = vsel %vm338_vm0, %v332_v4, -inf  ;;  %v339_v6 = vsel %vm338_vm0, %v332_v4, inf  ;;  %v252_v7 = vpop.f32.mrf.mxu1 }
  0xc5   :  { %347 = vmax.xlane.f32.xlu1 %v345_v5  ;;  %341 = vmin.xlane.f32.xlu0 %v339_v6 }
  0xc8   :  { %v238_v46 = vpop.f32.mrf.mxu0 }
  0xc9   :  { %v333_v8 = vpop.f32.mrf.mxu2 }
  0xca   :  { %v334_v9 = vadd.f32 %v333_v8, %v252_v7 }
  0xcc   :  { %v346_v10 = vsel %vm338_vm0, %v334_v9, -inf  ;;  %v340_v11 = vsel %vm338_vm0, %v334_v9, inf }
  0xcd   :  { %349 = vmax.xlane.f32.xlu1 %v346_v10  ;;  %343 = vmin.xlane.f32.xlu0 %v340_v11 }
  0xcf   :  { %v454_v52 = vpop.f32.mrf.mxu3 }
  0xd0   :  { %v455_v56 = vadd.f32 %v818_v54, %v454_v52 }
  0xd7   :  { %v456_v55 = vpop.f32.mrf.mxu3 }
  0xd8   :  { %v457_v57 = vadd.f32 %v818_v54, %v456_v55 }
 0x138   :  { %v348_v25 = vpop.xlane.xlu1 %347  ;;  %v342_v26 = vpop.xlane.xlu0 %341 }
 0x139   :  { %v351_v28 = vsub.f32 %v348_v25, %v342_v26  ;;  %v357_v33 = vsub.f32 %v332_v4, %v342_v26 }
 0x13b   :  { %v353_v29 = vadd.f32 1e-08, %v351_v28 }
 0x13d   :  { %819 = vrcp.f32 %v353_v29 }
 0x140   :  { %v350_v30 = vpop.xlane.xlu1 %349  ;;  %v344_v31 = vpop.xlane.xlu0 %343 }
 0x141   :  { %v352_v32 = vsub.f32 %v350_v30, %v344_v31  ;;  %v358_v39 = vsub.f32 %v334_v9, %v344_v31 }
 0x143   :  { %v820_v34 = vpop.eup %819  ;;  %v354_v35 = vadd.f32 1e-08, %v352_v32 }
 0x144   :  { %v359_v36 = vmul.f32 %v820_v34, %v357_v33 }
 0x145   :  { %821 = vrcp.f32 %v354_v35 }
 0x146   :  { %v361_v37 = vsel %vm338_vm0, %v359_v36, 0.0 }
 0x147   :  { %363 = vst [vmem:[#allocation15] sm:$0xff] %v361_v37  ;;  %v367_v41 = vmul.f32 0.01, %v361_v37  ;;  %vm365_vm1 = vcmp.ge.f32.partialorder %v361_v37, 0.0 }
 0x149   :  { %v369_v44 = vsel %vm365_vm1, %v361_v37, %v367_v41 }
 0x14a   :  { %v371_v48 = vadd.f32 %v369_v44, %v236_v38 }
 0x14b   :  { %v822_v40 = vpop.eup %821 }
 0x14c   :  { %v360_v42 = vmul.f32 %v822_v40, %v358_v39 }
 0x14e   :  { %v362_v43 = vsel %vm338_vm0, %v360_v42, 0.0 }
 0x14f   :  { %364 = vst [vmem:[#allocation15 + $0x8] sm:$0xff] %v362_v43  ;;  %vm366_vm2 = vcmp.ge.f32.partialorder %v362_v43, 0.0  ;;  %v368_v45 = vmul.f32 0.01, %v362_v43 }
 0x150   :  { %576 = dma.vmem_to_hbm [thread:$0]  %s569_s12, 256, %s571_s18, [#allocation16], %s1028_s13, %s1028_s13, %s1029_s14  }
 0x151   :  { %v370_v47 = vsel %vm366_vm2, %v362_v43, %v368_v45 }
 0x152   :  { %v372_v49 = vadd.f32 %v370_v47, %v238_v46 }
 0x154   :  { %v799_v50 = vpack.c.bf16 %v372_v49, %v371_v48 }
 0x156   :  { %800 = vst [vmem:[#allocation2] sm:$0xff] %v799_v50  }
 0x15d   :  { %v787_v51 = vld [vmem:[#allocation2] sm:$0xff] }
 0x15e   :  { %539 = vmatmul.bf16.vlgmr.msrb.gmra.mxu0 %v787_v51 }
 0x1db   :  { %v540_v53 = vpop.f32.mrf.mxu0 }
 0x1dc   :  { %v545_v59 = vadd.f32 %v540_v53, %v455_v56 }
 0x1e3   :  { %v542_v58 = vpop.f32.mrf.mxu0 }
 0x1e4   :  { %v546_v60 = vadd.f32 %v542_v58, %v457_v57 }
 0x1e6   :  { %v804_v61 = vpack.c.bf16 %v546_v60, %v545_v59 }
 0x1e8   :  { %805 = vst [vmem:[#allocation14] sm:$0xff] %v804_v61  }
 0x1e9   :  { %563 = dma.vmem_to_hbm [thread:$0]  %s556_s21, 128, %s558_s23, [#allocation5], %s1031_s17, %s1031_s17, %s1032_s1  }
 0x1ea   :  { %1023 = dma.done.wait [#allocation5], 128  }
 0x1eb   :  { %1024 = vsyncadd [#allocation5], 4294967168 }
 0x1ec   :  { %1025 = dma.done.wait [#allocation16], 256  }
 0x1ed   :  { %1026 = vsyncadd [#allocation16], 4294967040 }
 0x1ee   :  { %585 = vsyncpa [#allocation4], 1 }
 0x1ef   :  { %586 = vsyncpa [#allocation7], 1 }
 0x1f0   :  { %587 = vsyncpa [#allocation10], 1 }
 0x1f1   :  { %588 = vsyncpa [#allocation13], 1 }
 0x1f2   :  { %589 = vsyncpa [#allocation5], 1 }
 0x1f3   :  { %590 = vsyncpa [#allocation16], 1 }

</bundles_post_ra>
